<compile_context>
chip_gen: v7x
topology: tpu7x:2x2x1
jax: 0.10.0
libtpu: 0.0.40
codegen_flags: <defaults>
</compile_context>

<pallas_src>
from functools import partial

import jax
import jax.numpy as jnp
from jax import lax
from jax.experimental import pallas as pl
from jax.experimental.pallas import tpu as pltpu

BETA = 1.0
POSITION_SCALE = 0.01
MATCH_PRIOR = 0.1


def _abx_kernel(prior_ref, x0_ref, x1_ref, m_ref, out_ref, *, match_prior):
    """One grid step: TB batch elements -> partial sums (tp, tp+fp)."""
    prior = prior_ref[0]                           # (S, S)      bf16, constant block
    x0 = jnp.squeeze(x0_ref[...], axis=1)          # (TB, S, C)  f32  (= triples[:,0])
    x1 = jnp.squeeze(x1_ref[...], axis=1)          # (TB, S, C)  f32  (= triples[:,1])
    m = m_ref[...]                                 # (TB, S, 3)  f32  mask channels in lanes

    m0 = m[:, :, 0:1]                              # (TB, S, 1)  row weights    (index i)
    m1 = m[:, :, 1:2]                              # (TB, S, 1)  pos col weights (index j)
    m2 = m[:, :, 2:3]                              # (TB, S, 1)  neg col weights (index j)

    a = x0 * m0                                    # (TB, S, C) f32 : A = m0 ⊙ x0
    bm = (x1 * m1).astype(jnp.bfloat16)            # (TB, S, C) bf16: B = m1 ⊙ x1

    # tp (prior part) = sum_ij m0_i * match_ij * P_ij * m1_j = sum(A ⊙ (P @ B)).
    # One (S,S)@(S,C) bf16 MXU contraction per batch element — the only S²-scale work.
    tb = a.shape[0]
    tp = jnp.float32(0.0)
    for t in range(tb):                            # tb is small & static -> fully unrolled
        pb = jnp.dot(prior, bm[t], preferred_element_type=jnp.float32)   # (S, C) f32
        tp = tp + jnp.sum(a[t] * pb)

    # Rank-1 (O(S*C)) side terms on data already resident in VMEM:
    #   tp (match_prior part) = mp * <x0ᵀ m0, x1ᵀ m2>
    #   tp + fp               =      <x0ᵀ m0, x1ᵀ (m1 + m2)>
    u0 = jnp.sum(a, axis=1)                        # (TB, C) = x0ᵀ m0
    u12 = jnp.sum(x1 * (m1 + m2), axis=1)          # (TB, C) = x1ᵀ (m1 + m2)
    u2 = jnp.sum(x1 * m2, axis=1)                  # (TB, C) = x1ᵀ m2
    tp = tp + match_prior * jnp.sum(u0 * u2)
    tpfp = jnp.sum(u0 * u12)

    # Lane-dense partials: lane 0 carries tp, lane 1 carries tp+fp, rest zero.
    lane = lax.broadcasted_iota(jnp.int32, out_ref.shape, 2)
    out_ref[...] = jnp.where(lane == 0, tp, jnp.where(lane == 1, tpfp, 0.0))


def _default_vmem_limit():
    # ~75% of physical VMEM: ~96 MiB on v5e/v6e (128 MiB), ~48 MiB on v7x (64 MiB),
    # leaving DMA/semaphore headroom (perf-review items #5 / #7).
    try:
        cap = int(pltpu.get_tpu_info().vmem_capacity_bytes)
        return max(32 * 1024 * 1024, (cap * 3) // 4)
    except Exception:
        return 48 * 1024 * 1024


def word_label_abx_loss(triples, masks, *, beta=BETA,
                        position_scale=POSITION_SCALE,
                        match_prior=MATCH_PRIOR,
                        block_b=8):
    """triples: (B, 3, S, C), masks: (B, 3, S) -> scalar loss (negative F-beta)."""
    B, three, S, C = triples.shape
    assert three == 3

    # Grid-invariant positional prior, computed once in XLA (hoisted out of the kernel).
    idx = jnp.arange(S, dtype=jnp.float32)
    dist = (idx[:, None] - idx[None, :]) ** 2
    logits = -position_scale * jnp.where(dist < 400.0, dist, 0.0)
    pos_prior = jax.nn.softmax(logits, axis=-1)                # (S, S) f32

    m = masks.astype(jnp.float32)                              # (B, 3, S)
    m0, m1, m2 = m[:, 0], m[:, 1], m[:, 2]

    # n_true depends only on the prior and the masks -> computed once here (#2).
    ntrue = (jnp.einsum('bs,st,bt->', m0, pos_prior, m1)
             + match_prior * jnp.sum(jnp.sum(m0, axis=1) * jnp.sum(m2, axis=1)))

    # The prior only feeds the MXU inside the kernel -> ship it as bf16 (#4).
    prior_k = pos_prior.astype(jnp.bfloat16)[None]             # (1, S, S)

    # Kernel-side masks in (B, S, 3) layout (mask channels in lanes).
    m_k = jnp.transpose(m, (0, 2, 1))                          # (B, S, 3)

    x = triples.astype(jnp.float32)                            # (B, 3, S, C)

    # Batch TB examples per grid step, but keep >= 2 grid blocks when B >= 2 so
    # the "parallel" batch axis shards across both TensorCores on v7x (#6).
    TB = max(1, min(block_b, B))
    nb = -(-B // TB)
    if nb == 1 and B > 1:
        TB = -(-B // 2)
        nb = -(-B // TB)
    B_pad = nb * TB
    if B_pad != B:
        # Zero padding contributes zero to tp / tp+fp.  (Pick block_b | B to
        # avoid this copy of the big tensor.)
        pad = B_pad - B
        x = jnp.pad(x, ((0, pad), (0, 0), (0, 0), (0, 0)))
        m_k = jnp.pad(m_k, ((0, pad), (0, 0), (0, 0)))

    kernel = partial(_abx_kernel, match_prior=match_prior)

    partials = pl.pallas_call(
        kernel,
        out_shape=jax.ShapeDtypeStruct((nb, 8, 128), jnp.float32),
        grid_spec=pltpu.PrefetchScalarGridSpec(
            num_scalar_prefetch=0,
            grid=(nb,),
            in_specs=[
                # Constant block index -> fetched into VMEM once, never re-DMA'd.
                pl.BlockSpec((1, S, S), lambda b: (0, 0, 0)),
                # The same (B,3,S,C) array is passed twice; each view DMAs only
                # its own slab (x0 = triples[:,0], x1 = triples[:,1]); the unused
                # triples[:,2] slab is never read from HBM.
                pl.BlockSpec((TB, 1, S, C), lambda b: (b, 0, 0, 0)),
                pl.BlockSpec((TB, 1, S, C), lambda b: (b, 1, 0, 0)),
                pl.BlockSpec((TB, S, 3), lambda b: (b, 0, 0)),
            ],
            out_specs=pl.BlockSpec((1, 8, 128), lambda b: (b, 0, 0)),
        ),
        compiler_params=pltpu.CompilerParams(
            dimension_semantics=("parallel",),        # independent per-block partials
            vmem_limit_bytes=_default_vmem_limit(),   # chip-aware scoped VMEM (#5/#7)
        ),
    )(prior_k, x, x, m_k)

    sums = jnp.sum(partials[:, 0, :], axis=0)        # (128,)
    tp, tpfp = sums[0], sums[1]
    beta2 = beta * beta
    # TODO(synk): all-zero masks give 0/0 (NaN) here, matching the reference; add
    # an epsilon if degenerate batches are possible.
    f_beta = (1.0 + beta2) * tp / (beta2 * ntrue + tpfp)
    return -f_beta


def _reference(triples, masks):
    """Pure-JAX f32 reference of the same (de-bugged) math for verification."""
    B, _, S, C = triples.shape
    i = jnp.arange(S, dtype=jnp.float32)
    dist = (i[:, None] - i[None, :]) ** 2
    logits = -POSITION_SCALE * jnp.where(dist < 400.0, dist, 0.0)
    pos_prior = jax.nn.softmax(logits, axis=-1)
    neg_prior = jnp.full((S, S), MATCH_PRIOR, dtype=jnp.float32)

    pos_pair = masks[:, 0][:, :, None] * masks[:, 1][:, None, :]
    neg_pair = masks[:, 0][:, :, None] * masks[:, 2][:, None, :]
    pos_match = jnp.einsum('bsc,btc->bst', triples[:, 0], triples[:, 1])
    neg_match = pos_match  # mirrors the reference (uses index 1 twice)

    tp = jnp.sum(pos_match * pos_prior * pos_pair + neg_match * neg_prior * neg_pair)
    tpfp = jnp.sum(pos_match * pos_pair + neg_match * neg_pair)
    ntrue = jnp.sum(pos_prior * pos_pair + neg_prior * neg_pair)
    beta2 = BETA ** 2
    return -(1.0 + beta2) * tp / (beta2 * ntrue + tpfp)


if __name__ == "__main__":
    key = jax.random.PRNGKey(0)
    B, S, C = 2, 8, 32
    k1, k2 = jax.random.split(key)

    # Soft cluster-assignment probabilities per frame.
    triples = jax.nn.softmax(jax.random.normal(k1, (B, 3, S, C), jnp.float32), axis=-1)

    # Deterministic length masks (different valid lengths per batch/view).
    lengths = jnp.array([[8, 6, 7],
                         [5, 8, 4]], dtype=jnp.int32)              # (B, 3)
    masks = (jnp.arange(S)[None, None, :] < lengths[:, :, None]).astype(jnp.float32)

    loss = jax.jit(word_label_abx_loss)(triples, masks)
    loss = jax.block_until_ready(loss)

    ref = _reference(triples, masks)
    # Only tp's prior term goes through a bf16 MXU contraction (everything else is
    # f32), so the tolerance vs. the f32 reference can stay modest.
    assert jnp.allclose(loss, ref, rtol=2e-2, atol=1e-3), (loss, ref)

    print("KERNEL_OK")
</pallas_src>

<mosaic_0001>
module attributes {stable_mosaic.version = 11 : i64} {
  func.func @_abx_kernel(%arg0: i32, %arg1: memref<1x8x8xbf16, #tpu.memory_space<vmem>>, %arg2: memref<1x1x8x32xf32, #tpu.memory_space<vmem>>, %arg3: memref<1x1x8x32xf32, #tpu.memory_space<vmem>>, %arg4: memref<1x8x3xf32, #tpu.memory_space<vmem>>, %arg5: memref<1x8x128xf32, #tpu.memory_space<vmem>>) attributes {dimension_semantics = [#tpu.dimension_semantics<parallel>], iteration_bounds = array<i64: 2>, scalar_prefetch = 0 : i64, scratch_operands = 0 : i64, tpu.core_type = #tpu.core_type<tc>, window_params = [{pipeline_mode = #tpu.pipeline_mode<synchronous>, transform_indices = @transform_0, window_bounds = array<i64: 1, 8, 8>}, {transform_indices = @transform_1, window_bounds = array<i64: 1, 1, 8, 32>}, {transform_indices = @transform_2, window_bounds = array<i64: 1, 1, 8, 32>}, {transform_indices = @transform_3, window_bounds = array<i64: 1, 8, 3>}, {transform_indices = @transform_4, window_bounds = array<i64: 1, 8, 128>}]} {
    %c0 = arith.constant 0 : index
    %c0_0 = arith.constant 0 : index
    %c0_1 = arith.constant 0 : index
    %0 = vector.load %arg1[%c0, %c0_0, %c0_1] : memref<1x8x8xbf16, #tpu.memory_space<vmem>>, vector<1x8x8xbf16>
    %1 = vector.shape_cast %0 : vector<1x8x8xbf16> to vector<8x8xbf16>
    %c0_2 = arith.constant 0 : index
    %c0_3 = arith.constant 0 : index
    %c0_4 = arith.constant 0 : index
    %c0_5 = arith.constant 0 : index
    %2 = vector.load %arg2[%c0_2, %c0_3, %c0_4, %c0_5] : memref<1x1x8x32xf32, #tpu.memory_space<vmem>>, vector<1x1x8x32xf32>
    %3 = vector.shape_cast %2 : vector<1x1x8x32xf32> to vector<1x8x32xf32>
    %c0_6 = arith.constant 0 : index
    %c0_7 = arith.constant 0 : index
    %c0_8 = arith.constant 0 : index
    %c0_9 = arith.constant 0 : index
    %4 = vector.load %arg3[%c0_6, %c0_7, %c0_8, %c0_9] : memref<1x1x8x32xf32, #tpu.memory_space<vmem>>, vector<1x1x8x32xf32>
    %5 = vector.shape_cast %4 : vector<1x1x8x32xf32> to vector<1x8x32xf32>
    %c0_10 = arith.constant 0 : index
    %c0_11 = arith.constant 0 : index
    %c0_12 = arith.constant 0 : index
    %6 = vector.load %arg4[%c0_10, %c0_11, %c0_12] : memref<1x8x3xf32, #tpu.memory_space<vmem>>, vector<1x8x3xf32>
    %7 = vector.extract_strided_slice %6 {offsets = [0, 0, 0], sizes = [1, 8, 1], strides = [1, 1, 1]} : vector<1x8x3xf32> to vector<1x8x1xf32>
    %8 = vector.extract_strided_slice %6 {offsets = [0, 0, 1], sizes = [1, 8, 1], strides = [1, 1, 1]} : vector<1x8x3xf32> to vector<1x8x1xf32>
    %9 = vector.extract_strided_slice %6 {offsets = [0, 0, 2], sizes = [1, 8, 1], strides = [1, 1, 1]} : vector<1x8x3xf32> to vector<1x8x1xf32>
    %10 = vector.broadcast %7 : vector<1x8x1xf32> to vector<1x8x32xf32>
    %11 = arith.mulf %3, %10 : vector<1x8x32xf32>
    %12 = vector.broadcast %8 : vector<1x8x1xf32> to vector<1x8x32xf32>
    %13 = arith.mulf %5, %12 : vector<1x8x32xf32>
    %14 = arith.truncf %13 : vector<1x8x32xf32> to vector<1x8x32xbf16>
    %15 = vector.shape_cast %14 : vector<1x8x32xbf16> to vector<8x32xbf16>
    %cst = arith.constant dense<0.000000e+00> : vector<8x32xf32>
    %16 = tpu.matmul %1, %15, %cst {dimension_numbers = #tpu.dot_dimension_numbers<[1], [0], [0], [1], [0, 0, 1, 1], [], []>} : vector<8x8xbf16>, vector<8x32xbf16>, vector<8x32xf32> -> vector<8x32xf32>
    %17 = vector.shape_cast %11 : vector<1x8x32xf32> to vector<8x32xf32>
    %18 = arith.mulf %17, %16 : vector<8x32xf32>
    %19 = vector.shape_cast %18 : vector<8x32xf32> to vector<1x8x32xf32>
    %cst_13 = arith.constant dense<0.000000e+00> : vector<1xf32>
    %20 = vector.multi_reduction <add>, %19, %cst_13 [1, 2] : vector<1x8x32xf32> to vector<1xf32>
    %21 = vector.shape_cast %20 : vector<1xf32> to vector<1x1x1xf32>
    %22 = vector.extract %21[0, 0, 0] : f32 from vector<1x1x1xf32>
    %cst_14 = arith.constant 0.000000e+00 : f32
    %23 = arith.addf %cst_14, %22 : f32
    %cst_15 = arith.constant dense<0.000000e+00> : vector<1x32xf32>
    %24 = vector.multi_reduction <add>, %11, %cst_15 [1] : vector<1x8x32xf32> to vector<1x32xf32>
    %25 = arith.addf %8, %9 : vector<1x8x1xf32>
    %26 = vector.broadcast %25 : vector<1x8x1xf32> to vector<1x8x32xf32>
    %27 = arith.mulf %5, %26 : vector<1x8x32xf32>
    %cst_16 = arith.constant dense<0.000000e+00> : vector<1x32xf32>
    %28 = vector.multi_reduction <add>, %27, %cst_16 [1] : vector<1x8x32xf32> to vector<1x32xf32>
    %29 = vector.broadcast %9 : vector<1x8x1xf32> to vector<1x8x32xf32>
    %30 = arith.mulf %5, %29 : vector<1x8x32xf32>
    %cst_17 = arith.constant dense<0.000000e+00> : vector<1x32xf32>
    %31 = vector.multi_reduction <add>, %30, %cst_17 [1] : vector<1x8x32xf32> to vector<1x32xf32>
    %32 = arith.mulf %24, %31 : vector<1x32xf32>
    %33 = vector.shape_cast %32 : vector<1x32xf32> to vector<1x1x32xf32>
    %cst_18 = arith.constant dense<0.000000e+00> : vector<1xf32>
    %34 = vector.multi_reduction <add>, %33, %cst_18 [1, 2] : vector<1x1x32xf32> to vector<1xf32>
    %35 = vector.shape_cast %34 : vector<1xf32> to vector<1x1x1xf32>
    %36 = vector.extract %35[0, 0, 0] : f32 from vector<1x1x1xf32>
    %cst_19 = arith.constant 1.000000e-01 : f32
    %37 = arith.mulf %cst_19, %36 : f32
    %38 = arith.addf %23, %37 : f32
    %39 = arith.mulf %24, %28 : vector<1x32xf32>
    %40 = vector.shape_cast %39 : vector<1x32xf32> to vector<1x1x32xf32>
    %cst_20 = arith.constant dense<0.000000e+00> : vector<1xf32>
    %41 = vector.multi_reduction <add>, %40, %cst_20 [1, 2] : vector<1x1x32xf32> to vector<1xf32>
    %42 = vector.shape_cast %41 : vector<1xf32> to vector<1x1x1xf32>
    %43 = vector.extract %42[0, 0, 0] : f32 from vector<1x1x1xf32>
    %44 = tpu.iota {dimensions = array<i32: 2>} : vector<1x8x128xi32>
    %c0_i32 = arith.constant 0 : i32
    %45 = vector.broadcast %c0_i32 : i32 to vector<1x8x128xi32>
    %46 = arith.cmpi eq, %44, %45 : vector<1x8x128xi32>
    %c1_i32 = arith.constant 1 : i32
    %47 = vector.broadcast %c1_i32 : i32 to vector<1x8x128xi32>
    %48 = arith.cmpi eq, %44, %47 : vector<1x8x128xi32>
    %cst_21 = arith.constant 0.000000e+00 : f32
    %49 = vector.broadcast %43 : f32 to vector<1x8x128xf32>
    %50 = vector.broadcast %cst_21 : f32 to vector<1x8x128xf32>
    %51 = arith.select %48, %49, %50 : vector<1x8x128xi1>, vector<1x8x128xf32>
    %52 = vector.broadcast %38 : f32 to vector<1x8x128xf32>
    %53 = arith.select %46, %52, %51 : vector<1x8x128xi1>, vector<1x8x128xf32>
    %c0_22 = arith.constant 0 : index
    %c0_23 = arith.constant 0 : index
    %c0_24 = arith.constant 0 : index
    %54 = vector.load %arg5[%c0_22, %c0_23, %c0_24] : memref<1x8x128xf32, #tpu.memory_space<vmem>>, vector<1x8x128xf32>
    tpu.vector_store %arg5[%c0_22, %c0_23, %c0_24], %53 {strides = array<i32>} : memref<1x8x128xf32, #tpu.memory_space<vmem>>, vector<1x8x128xf32>,
    return
  }
  func.func @transform_0(%arg0: i32) -> (i32, i32, i32) {
    %c0_i32 = arith.constant 0 : i32
    %c0_i32_0 = arith.constant 0 : i32
    %c0_i32_1 = arith.constant 0 : i32
    %c0_i32_2 = arith.constant 0 : i32
    return %c0_i32, %c0_i32_0, %c0_i32_1 : i32, i32, i32
  }
  func.func @transform_1(%arg0: i32) -> (i32, i32, i32, i32) {
    %c0_i32 = arith.constant 0 : i32
    %c0_i32_0 = arith.constant 0 : i32
    %c0_i32_1 = arith.constant 0 : i32
    %c0_i32_2 = arith.constant 0 : i32
    return %arg0, %c0_i32, %c0_i32_0, %c0_i32_1 : i32, i32, i32, i32
  }
  func.func @transform_2(%arg0: i32) -> (i32, i32, i32, i32) {
    %c1_i32 = arith.constant 1 : i32
    %c0_i32 = arith.constant 0 : i32
    %c0_i32_0 = arith.constant 0 : i32
    %c0_i32_1 = arith.constant 0 : i32
    return %arg0, %c1_i32, %c0_i32, %c0_i32_0 : i32, i32, i32, i32
  }
  func.func @transform_3(%arg0: i32) -> (i32, i32, i32) {
    %c0_i32 = arith.constant 0 : i32
    %c0_i32_0 = arith.constant 0 : i32
    %c0_i32_1 = arith.constant 0 : i32
    return %arg0, %c0_i32, %c0_i32_0 : i32, i32, i32
  }
  func.func @transform_4(%arg0: i32) -> (i32, i32, i32) {
    %c0_i32 = arith.constant 0 : i32
    %c0_i32_0 = arith.constant 0 : i32
    %c0_i32_1 = arith.constant 0 : i32
    return %arg0, %c0_i32, %c0_i32_0 : i32, i32, i32
  }
}

</mosaic_0001>

<bundles_post_ra>
// kernel: word_label_abx_loss.1
= control target key start
LH: loop header
LB: loop body
LE: loop exit
PB: predicated region body
PF: predicated region fallthrough
CT: control target
= control target key end

     0   :  { %s552_s15 = smov 0   ;;  %s590_s0 = inlined_call_operand.vmem [shape: bf16[1,8,8], index: 0, kind: input, shape index: {}]   ;;  %s591_s1 = inlined_call_operand.vmem [shape: f32[2,3,8,32], index: 1, kind: input, shape index: {}, may-alias: {1,2}]   ;;  %s592_s2 = inlined_call_operand.vmem [shape: f32[2,3,8,32], index: 2, kind: input, shape index: {}, may-alias: {1,2}]   ;;  %s593_s3 = inlined_call_operand.vmem [shape: f32[2,8,3], index: 3, kind: input, shape index: {}]   ;;  %s594_s4 = inlined_call_operand.vmem [shape: f32[2,8,128], index: 4, kind: output, shape index: {}]  }
   0x1 LB: > { %s467_s16 = sadd.s32 4294967295, %s519_s15   ;;  %p471_p0 = scmp.ge.s32.totalorder %s519_s15, 1  ;;  %s519_s15 = sphi %s552_s15, %s14_s15  }
   0x2   : > { %p182_p1 = scmp.lt.s32.totalorder %s519_s15, 3 }
   0x4   : > { %p183_p2 = pnand %p471_p0, %p182_p1 }
   0x5   : > { %p217_p3 = scmp.lt.s32.totalorder (!%p183_p2), %s467_s16, 1  ;;  %v521_v0 = vmov (!%p183_p2), 1   ;;  %v522_v1 = vmov (!%p183_p2), 0   ;;  %s523_s21 = smov (!%p183_p2), 127   ;;  %v524_v3 = vmov (!%p183_p2), 2   ;;  %v525_v4 = vmov (!%p183_p2), 0.0  }
   0x6   : > { %186 = sbr.rel (%p183_p2) target bundleno = 580 (0x244), region = 36  ;;  %509 = vset.pattern.permute.xlu0 (!%p183_p2), %v521_v0  ;;  %510 = vset.pattern.permute.xlu1 (!%p183_p2), %v522_v1  ;;  %vm526_vm0 = vmmov (!%p183_p2), 0   ;;  %vm302_vm1 = vcmask (!%p183_p2), 261120   ;;  %vm257_vm2 = vcmask (!%p183_p2), 1043456   ;;  %v237_v17 = vld [vmem:[%s590_s0] sm:$0xf] (!%p183_p2) }
   0x7   : > { %482 = vmatprep.subr.bf16.mxu0 (!%p183_p2), %v525_v4  ;;  %484 = vmatprep.mubr.msk.bf16.mxu0 (!%p183_p2), %vm526_vm0, %v525_v4  ;;  %vm253_vm3 = vcmask (!%p183_p2), 64512   ;;  %vm351_vm4 = vcmask (!%p183_p2), 253952  }
   0xd   : > { %s596_s16 = smov (!%p217_p3, %s467_s16), 1 }
   0xe   : > { %s474_s17 = sshll.u32 %s596_s16, 3  ;;  %s488_s22 = smul.u32 24, %s596_s16 }
   0xf   : > { %s231_s20 = scalar_lea.vmem %s593_s3, %s474_s17  ;;  %s235_s12 = scalar_lea.vmem %s594_s4, %s474_s17 }
  0x10   : > { %v240_v2 = vld [vmem:[%s231_s20] sm:$0xff]  ;;  %s425_s25 = scalar_lea.vmem %s592_s2, %s488_s22  ;;  %s221_s28 = scalar_lea.vmem %s591_s1, %s488_s22 }
  0x11   : > { %248 = vperm.xlu0 %509, %v240_v2   ;;  %243 = vperm.xlu1 %510, %v240_v2   ;;  %v476_v5 = vld [vmem:[%s425_s25 + $0x8] sm:$0xff]  ;;  %v238_v6 = vld [vmem:[%s221_s28] sm:$0xff] }
  0x15   : > { %321 = vrot.lane.b32.xlu0 %v240_v2, %s523_s21  ;;  %511 = vset.pattern.permute.xlu1 %v524_v3 }
  0x16   : > { %339 = vperm.xlu1 %511, %v240_v2  }
  0x90   : > { %v249_v7 = vpop.permute.xlu0 %248  ;;  %v244_v8 = vpop.permute.xlu1 %243 }
  0x91   : > { %v251_v9 = vmul.f32 %v476_v5, %v249_v7  ;;  %v246_v10 = vmul.f32 %v244_v8, %v238_v6  ;;  %v375_v8 = vlaneseq }
  0x93   : > { %v252_v11 = vpack.c.bf16 %v251_v9, %v251_v9  ;;  %v314_v13 = vsel %vm302_vm1, %v246_v10, 0.0  ;;  %v376_v9 = vand.u32 127, %v375_v8 }
  0x94   : > { %v322_v12 = vpop.permute.xlu0 %321  ;;  %v315_v19 = vrot.slane %v314_v13, 4 }
  0x95   : > { %v324_v14 = vadd.f32 %v322_v12, %v240_v2  ;;  %v259_v15 = vsel %vm257_vm2, %v252_v11, 0  ;;  %v340_v16 = vpop.permute.xlu1 %339  ;;  %vm378_vm5 = vcmp.eq.s32.totalorder %v376_v9, 1  ;;  %vm377_vm6 = vcmp.eq.s32.totalorder %v376_v9, 0 }
  0x96   : > { %483 = vmatpush3.bf16.msra.mxu0 %v259_v15  ;;  %v342_v18 = vmul.f32 %v476_v5, %v340_v16  ;;  %v316_v22 = vadd.f32 %v315_v19, %v314_v13 }
  0x97   : > { %327 = vperm.xlu0 %509, %v324_v14  }
  0x98   : > { %v343_v20 = vsel %vm302_vm1, %v342_v18, 0.0  ;;  %v317_v24 = vrot.slane %v316_v22, 2 }
  0x99   : > { %485 = vmatmul.mubr.msk.bf16.vlgmr.msra.gmra.mrb[0].mxu0 %vm253_vm3, %v237_v17  ;;  %v344_v21 = vrot.slane %v343_v20, 4 }
  0x9a   : > { %v318_v26 = vadd.f32 %v317_v24, %v316_v22 }
  0x9b   : > { %v345_v23 = vadd.f32 %v344_v21, %v343_v20  ;;  %512 = vset.pattern.permute.xlu0 %v524_v3 }
  0x9c   : > { %v319_v28 = vrot.slane %v318_v26, 1 }
  0x9d   : > { %v346_v25 = vrot.slane %v345_v23, 2 }
  0x9e   : > { %v320_v30 = vadd.f32 %v319_v28, %v318_v26 }
  0x9f   : > { %v347_v27 = vadd.f32 %v346_v25, %v345_v23 }
  0xa1   : > { %v348_v29 = vrot.slane %v347_v27, 1 }
  0xa3   : > { %v349_v31 = vadd.f32 %v348_v29, %v347_v27 }
  0xa5   : > { %v350_v32 = vmul.f32 %v349_v31, %v320_v30 }
  0xa7   : > { %v352_v33 = vsel %vm351_vm4, %v350_v32, 0.0 }
  0xb6   : > { %353 = vadd.xlane.f32.xlu0 %v352_v33 }
 0x116   : > { %v328_v34 = vpop.permute.xlu0 %327 }
 0x117   : > { %v330_v35 = vmul.f32 %v476_v5, %v328_v34 }
 0x119   : > { %v331_v36 = vsel %vm302_vm1, %v330_v35, 0.0 }
 0x11a   : > { %v332_v37 = vrot.slane %v331_v36, 4 }
 0x11c   : > { %v333_v38 = vadd.f32 %v332_v37, %v331_v36 }
 0x11e   : > { %v334_v39 = vrot.slane %v333_v38, 2 }
 0x120   : > { %v335_v40 = vadd.f32 %v334_v39, %v333_v38 }
 0x122   : > { %v336_v41 = vrot.slane %v335_v40, 1 }
 0x124   : > { %v337_v42 = vadd.f32 %v336_v41, %v335_v40 }
 0x126   : > { %v364_v43 = vmul.f32 %v337_v42, %v320_v30 }
 0x128   : > { %v365_v44 = vsel %vm351_vm4, %v364_v43, 0.0 }
 0x129   : > { %366 = vadd.xlane.f32.xlu0 %v365_v44 }
 0x143   : > { %v354_v51 = vpop.xlane.xlu0 %353 }
 0x144   : > { %v355_v53 = vrot.slane %v354_v51, 4 }
 0x146   : > { %v356_v55 = vadd.f32 %v355_v53, %v354_v51 }
 0x148   : > { %v357_v57 = vrot.slane %v356_v55, 2 }
 0x14a   : > { %v358_v62 = vadd.f32 %v357_v57, %v356_v55 }
 0x14c   : > { %v359_v2 = vrot.slane %v358_v62, 1 }
 0x14e   : > { %v360_v6 = vadd.f32 %v359_v2, %v358_v62 }
 0x16c   : > { %v295_v45 = vpop.f32.mrb[0].mxu0 }
 0x16d   : > { %v301_v46 = vmul.f32 %v295_v45, %v246_v10  ;;  %v486_v47 = vpop.f32.mrb[1].mxu0 }
 0x16e   : > { %v298_v48 = vpop.f32.mrb[2].mxu0 }
 0x16f   : > { %v487_v49 = vpop.f32.mrb[3].mxu0  ;;  %v303_v50 = vsel %vm302_vm1, %v301_v46, 0.0 }
 0x170   : > { %304 = vadd.xlane.f32.xlu1 %v303_v50 }
 0x1b6   : > { %v367_v52 = vpop.xlane.xlu0 %366 }
 0x1b7   : > { %v368_v54 = vrot.slane %v367_v52, 4 }
 0x1b9   : > { %v369_v56 = vadd.f32 %v368_v54, %v367_v52 }
 0x1bb   : > { %v370_v59 = vrot.slane %v369_v56, 2 }
 0x1bd   : > { %v371_v63 = vadd.f32 %v370_v59, %v369_v56 }
 0x1bf   : > { %v372_v4 = vrot.slane %v371_v63, 1 }
 0x1c1   : > { %v373_v7 = vadd.f32 %v372_v4, %v371_v63 }
 0x1fd   : > { %v305_v58 = vpop.xlane.xlu1 %304 }
 0x1fe   : > { %v306_v60 = vrot.slane %v305_v58, 4 }
 0x200   : > { %v307_v61 = vadd.f32 %v306_v60, %v305_v58 }
 0x202   : > { %v308_v0 = vrot.slane %v307_v61, 2 }
 0x204   : > { %v309_v1 = vadd.f32 %v308_v0, %v307_v61 }
 0x206   : > { %v310_v3 = vrot.slane %v309_v1, 1 }
 0x208   : > { %v311_v5 = vadd.f32 %v310_v3, %v309_v1 }
 0x20a   : > { %489 = vpush %v311_v5 }
 0x20b   : > { %491 = vpush %v360_v6 }
 0x20c   : > { %493 = vpush %v373_v7 }
 0x23b   : > { %s490_s5 = spop %489 }
 0x23c   : > { %s492_s6 = spop %491 }
 0x23d   : > { %s362_s7 = smul.f32 0.1, %s492_s6  ;;  %s494_s8 = spop %493 }
 0x23e   : > { %v379_v10 = vstv %s494_s8 }
 0x23f   : > { %s363_s9 = sadd.f32 %s490_s5, %s362_s7  ;;  %v380_v12 = vsel %vm378_vm5, %v379_v10, 0.0 }
 0x241   : > { %v381_v11 = vstv %s363_s9 }
 0x242   : > { %v382_v13 = vsel %vm377_vm6, %v381_v11, %v380_v12 }
 0x243   : > { %383 = vst [vmem:[%s235_s12] sm:$0xff] %v382_v13 }
 0x244 PF: > { %s14_s15 = sadd.s32 1, %s519_s15  }
 0x245   : > { %p11_p4 = scmp.ge.s32.totalorder %s14_s15, 4  }
 0x247   :  { %13 = sbr.rel (!%p11_p4) target bundleno = 1 (0x1), region = 72 }

</bundles_post_ra>
